<compile_context>
chip_gen: v7x
topology: tpu7x:2x2x1
jax: 0.10.0
libtpu: 0.0.40
codegen_flags: <defaults>
</compile_context>

<pallas_src>
import jax
import jax.numpy as jnp
from jax.experimental import pallas as pl
from jax.experimental.pallas import tpu as pltpu


def attention_kernel(h_ref, a_ref, wh_ref, wa_ref, bias_ref, v_ref,
                     o_ref, hb_ref, score_ref):
    """Grid = (batch, s_tiles).

    h_ref     : (1, E)        hidden row for this batch (matmul dtype)
    a_ref     : (s_tile, E)   annotation tile for this batch (matmul dtype)
    wh_ref    : (E, E)        W[:, :E].T   (matmul dtype)
    wa_ref    : (E, E)        W[:, E:].T   (matmul dtype)
    bias_ref  : (1, E)        f32
    v_ref     : (E, 1)        f32
    o_ref     : (S, 1)        f32 output block (resident across the s axis)
    hb_ref    : (1, E)        f32 scratch: hidden @ Wh^T + bias
    score_ref : (S, 1)        f32 scratch: per-batch score column
    """
    s_idx = pl.program_id(1)
    n_s = pl.num_programs(1)
    s_tile = a_ref.shape[0]

    # Hidden projection + bias: compute once per batch row, reuse for all S
    # tiles (hidden and Wh^T do not vary along the s axis).
    @pl.when(s_idx == 0)
    def _():
        hb_ref[...] = (
            jnp.dot(h_ref[...], wh_ref[...], preferred_element_type=jnp.float32)
            + bias_ref[...]
        )

    # Annotation projection on the MXU, f32 accumulation.
    ap = jnp.dot(a_ref[...], wa_ref[...], preferred_element_type=jnp.float32)
    t = jnp.tanh(ap + hb_ref[...])                       # (s_tile, E), f32

    # v-weighted reduction as an MXU matvec: (s_tile, E) @ (E, 1) -> (s_tile, 1)
    sc = jnp.dot(t, v_ref[...], preferred_element_type=jnp.float32)

    row0 = pl.multiple_of(s_idx * s_tile, s_tile)
    score_ref[pl.ds(row0, s_tile), :] = sc

    # Finalize: stable softmax over the full sequence once all tiles are in.
    @pl.when(s_idx == n_s - 1)
    def _():
        scores = score_ref[...]                          # (S, 1)
        m = jnp.max(scores, axis=0, keepdims=True)
        e = jnp.exp(scores - m)
        denom = jnp.sum(e, axis=0, keepdims=True)
        o_ref[...] = (e * pl.reciprocal(denom, approx=True)).astype(o_ref.dtype)


def _choose_s_tile(S, E, itemsize, budget_bytes=4 << 20):
    """Largest multiple-of-8 divisor of S whose (s_tile, E) block fits the
    budget; falls back to full-S (always a legal block). The 4 MiB budget keeps
    double-buffered tiles far below the scoped-VMEM default on all generations
    (including v7x's 64 MiB physical VMEM)."""
    if S % 8 != 0:
        return S
    limit = max(8, budget_bytes // max(1, E * itemsize))
    best = 8
    t = 8
    while t <= S:
        if S % t == 0 and t <= limit:
            best = t
        t += 8
    return best


def attention_forward(hidden, annotation, W, bias, v, *, matmul_dtype=jnp.float32):
    """hidden: (1, B, E), annotation: (S, B, E) -> (B, 1, S).

    matmul_dtype=jnp.bfloat16 halves HBM traffic for the annotation stream
    (recommended on v6e/v7x); tanh/softmax always run in f32.
    """
    S, B, E = annotation.shape

    # --- wrapper-side layout plumbing (XLA, once per call) -------------------
    # Linear(cat(h, a)) == h @ W[:, :E].T + a @ W[:, E:].T + bias
    wh_t = jnp.asarray(W[:, :E].T, dtype=matmul_dtype)            # (E, E)
    wa_t = jnp.asarray(W[:, E:].T, dtype=matmul_dtype)            # (E, E)
    h_b1e = jnp.transpose(hidden, (1, 0, 2)).astype(matmul_dtype)      # (B, 1, E)
    a_bse = jnp.transpose(annotation, (1, 0, 2)).astype(matmul_dtype)  # (B, S, E)
    bias_2d = bias.reshape(1, E).astype(jnp.float32)
    v_col = v.reshape(E, 1).astype(jnp.float32)

    s_tile = _choose_s_tile(S, E, jnp.dtype(matmul_dtype).itemsize)
    n_s = S // s_tile

    out = pl.pallas_call(
        attention_kernel,
        out_shape=jax.ShapeDtypeStruct((B, S, 1), jnp.float32),
        grid_spec=pltpu.PrefetchScalarGridSpec(
            num_scalar_prefetch=0,
            grid=(B, n_s),
            in_specs=[
                pl.BlockSpec((None, 1, E), lambda b, s: (b, 0, 0)),       # hidden
                pl.BlockSpec((None, s_tile, E), lambda b, s: (b, s, 0)),  # annotation
                pl.BlockSpec((E, E), lambda b, s: (0, 0)),                # Wh^T
                pl.BlockSpec((E, E), lambda b, s: (0, 0)),                # Wa^T
                pl.BlockSpec((1, E), lambda b, s: (0, 0)),                # bias
                pl.BlockSpec((E, 1), lambda b, s: (0, 0)),                # v
            ],
            # Same block index across the s axis -> output resident, written
            # once at the last s tile.
            out_specs=pl.BlockSpec((None, S, 1), lambda b, s: (b, 0, 0)),
            scratch_shapes=[
                pltpu.VMEM((1, E), jnp.float32),   # hidden @ Wh^T + bias
                pltpu.VMEM((S, 1), jnp.float32),   # per-batch score column
            ],
        ),
        compiler_params=pltpu.CompilerParams(
            dimension_semantics=("parallel", "arbitrary"),
        ),
    )(h_b1e, a_bse, wh_t, wa_t, bias_2d, v_col)

    # (B, S, 1) -> (B, 1, S); matches F.softmax(score.t(), dim=1).unsqueeze(1).
    # TODO(synk): for large S, emit the kernel output lane-dense as (B, S_pad)
    # with in-kernel masking instead of this tiny wrapper transpose.
    return jnp.transpose(out, (0, 2, 1))


def attention_reference(hidden, annotation, W, bias, v):
    S, B, E = annotation.shape
    h_exp = jnp.broadcast_to(hidden, (S, B, E))
    cat = jnp.concatenate([h_exp, annotation], axis=2)           # (S, B, 2E)
    lin = jnp.einsum('sbk,ek->sbe', cat, W) + bias               # (S, B, E)
    t = jnp.tanh(lin)
    score = jnp.sum(v * t, axis=2)                               # (S, B)
    return jax.nn.softmax(score.T, axis=1)[:, None, :]           # (B, 1, S)


if __name__ == "__main__":
    S, B, E = 8, 2, 32   # seq=8, batch=2, embedding=32

    key = jax.random.PRNGKey(0)
    k_h, k_a, k_w, k_b, k_v = jax.random.split(key, 5)

    # Shapes per nn.Linear(2E, E) and nn.Parameter(E)
    W = jax.random.normal(k_w, (E, 2 * E), dtype=jnp.float32) * 0.1
    bias = jax.random.normal(k_b, (E,), dtype=jnp.float32) * 0.1
    v = jax.random.normal(k_v, (E,), dtype=jnp.float32) * 0.1

    hidden = jax.random.normal(k_h, (1, B, E), dtype=jnp.float32)
    annotation = jax.random.normal(k_a, (S, B, E), dtype=jnp.float32)

    ref = attention_reference(hidden, annotation, W, bias, v)

    # f32 path (tolerance loosened only for the approximate EUP reciprocal).
    out_f32 = jax.block_until_ready(attention_forward(hidden, annotation, W, bias, v))
    assert out_f32.shape == (B, 1, S), out_f32.shape
    assert jnp.allclose(out_f32, ref, atol=1e-3, rtol=1e-3), "f32 mismatch vs reference"

    # bf16 matmul-input path (halved HBM traffic; v6e/v7x recommendation).
    out_bf16 = jax.block_until_ready(
        attention_forward(hidden, annotation, W, bias, v, matmul_dtype=jnp.bfloat16))
    assert out_bf16.shape == (B, 1, S), out_bf16.shape
    assert jnp.allclose(out_bf16, ref, atol=1e-2, rtol=1e-2), "bf16 mismatch vs reference"

    print("KERNEL_OK")
</pallas_src>

<mosaic_0001>
module attributes {stable_mosaic.version = 11 : i64} {
  func.func @attention_kernel(%arg0: i32, %arg1: i32, %arg2: memref<1x1x32xf32, #tpu.memory_space<vmem>>, %arg3: memref<1x8x32xf32, #tpu.memory_space<vmem>>, %arg4: memref<32x32xf32, #tpu.memory_space<vmem>>, %arg5: memref<32x32xf32, #tpu.memory_space<vmem>>, %arg6: memref<1x32xf32, #tpu.memory_space<vmem>>, %arg7: memref<32x1xf32, #tpu.memory_space<vmem>>, %arg8: memref<1x8x1xf32, #tpu.memory_space<vmem>>, %arg9: memref<1x32xf32, #tpu.memory_space<vmem>>, %arg10: memref<8x1xf32, #tpu.memory_space<vmem>>) attributes {dimension_semantics = [#tpu.dimension_semantics<parallel>, #tpu.dimension_semantics<arbitrary>], iteration_bounds = array<i64: 2, 1>, scalar_prefetch = 0 : i64, scratch_operands = 2 : i64, tpu.core_type = #tpu.core_type<tc>, window_params = [{transform_indices = @transform_0, window_bounds = array<i64: 1, 1, 32>}, {transform_indices = @transform_1, window_bounds = array<i64: 1, 8, 32>}, {pipeline_mode = #tpu.pipeline_mode<synchronous>, transform_indices = @transform_2, window_bounds = array<i64: 32, 32>}, {pipeline_mode = #tpu.pipeline_mode<synchronous>, transform_indices = @transform_3, window_bounds = array<i64: 32, 32>}, {pipeline_mode = #tpu.pipeline_mode<synchronous>, transform_indices = @transform_4, window_bounds = array<i64: 1, 32>}, {pipeline_mode = #tpu.pipeline_mode<synchronous>, transform_indices = @transform_5, window_bounds = array<i64: 32, 1>}, {transform_indices = @transform_6, window_bounds = array<i64: 1, 8, 1>}]} {
    %c0_i32 = arith.constant 0 : i32
    %0 = arith.cmpi eq, %arg1, %c0_i32 : i32
    %1 = arith.extui %0 : i1 to i32
    %c0_i32_0 = arith.constant 0 : i32
    %2 = arith.cmpi ne, %1, %c0_i32_0 : i32
    scf.if %2 {
      %c0_13 = arith.constant 0 : index
      %c0_14 = arith.constant 0 : index
      %c0_15 = arith.constant 0 : index
      %20 = vector.load %arg2[%c0_13, %c0_14, %c0_15] : memref<1x1x32xf32, #tpu.memory_space<vmem>>, vector<1x1x32xf32>
      %21 = vector.shape_cast %20 : vector<1x1x32xf32> to vector<1x32xf32>
      %c0_16 = arith.constant 0 : index
      %c0_17 = arith.constant 0 : index
      %22 = vector.load %arg4[%c0_16, %c0_17] : memref<32x32xf32, #tpu.memory_space<vmem>>, vector<32x32xf32>
      %cst_18 = arith.constant dense<0.000000e+00> : vector<1x32xf32>
      %23 = tpu.matmul %21, %22, %cst_18 {dimension_numbers = #tpu.dot_dimension_numbers<[1], [0], [0], [1], [0, 0, 1, 1], [], []>} : vector<1x32xf32>, vector<32x32xf32>, vector<1x32xf32> -> vector<1x32xf32>
      %c0_19 = arith.constant 0 : index
      %c0_20 = arith.constant 0 : index
      %24 = vector.load %arg6[%c0_19, %c0_20] : memref<1x32xf32, #tpu.memory_space<vmem>>, vector<1x32xf32>
      %25 = arith.addf %23, %24 : vector<1x32xf32>
      %c0_21 = arith.constant 0 : index
      %c0_22 = arith.constant 0 : index
      %26 = vector.load %arg9[%c0_21, %c0_22] : memref<1x32xf32, #tpu.memory_space<vmem>>, vector<1x32xf32>
      tpu.vector_store %arg9[%c0_21, %c0_22], %25 {strides = array<i32>} : memref<1x32xf32, #tpu.memory_space<vmem>>, vector<1x32xf32>,
    } else {
    }
    %c0 = arith.constant 0 : index
    %c0_1 = arith.constant 0 : index
    %c0_2 = arith.constant 0 : index
    %3 = vector.load %arg3[%c0, %c0_1, %c0_2] : memref<1x8x32xf32, #tpu.memory_space<vmem>>, vector<1x8x32xf32>
    %4 = vector.shape_cast %3 : vector<1x8x32xf32> to vector<8x32xf32>
    %c0_3 = arith.constant 0 : index
    %c0_4 = arith.constant 0 : index
    %5 = vector.load %arg5[%c0_3, %c0_4] : memref<32x32xf32, #tpu.memory_space<vmem>>, vector<32x32xf32>
    %cst = arith.constant dense<0.000000e+00> : vector<8x32xf32>
    %6 = tpu.matmul %4, %5, %cst {dimension_numbers = #tpu.dot_dimension_numbers<[1], [0], [0], [1], [0, 0, 1, 1], [], []>} : vector<8x32xf32>, vector<32x32xf32>, vector<8x32xf32> -> vector<8x32xf32>
    %c0_5 = arith.constant 0 : index
    %c0_6 = arith.constant 0 : index
    %7 = vector.load %arg9[%c0_5, %c0_6] : memref<1x32xf32, #tpu.memory_space<vmem>>, vector<1x32xf32>
    %8 = vector.broadcast %7 : vector<1x32xf32> to vector<8x32xf32>
    %9 = arith.addf %6, %8 : vector<8x32xf32>
    %10 = math.tanh %9 : vector<8x32xf32>
    %c0_7 = arith.constant 0 : index
    %c0_8 = arith.constant 0 : index
    %11 = vector.load %arg7[%c0_7, %c0_8] : memref<32x1xf32, #tpu.memory_space<vmem>>, vector<32x1xf32>
    %cst_9 = arith.constant dense<0.000000e+00> : vector<8x1xf32>
    %12 = tpu.matmul %10, %11, %cst_9 {dimension_numbers = #tpu.dot_dimension_numbers<[1], [0], [0], [1], [0, 0, 1, 1], [], []>} : vector<8x32xf32>, vector<32x1xf32>, vector<8x1xf32> -> vector<8x1xf32>
    %c8_i32 = arith.constant 8 : i32
    %13 = arith.muli %arg1, %c8_i32 : i32
    %14 = tpu.assume_multiple %13, 8 : i32
    %15 = arith.index_cast %14 : i32 to index
    %c0_10 = arith.constant 0 : index
    %16 = vector.load %arg10[%15, %c0_10] : memref<8x1xf32, #tpu.memory_space<vmem>>, vector<8x1xf32>
    tpu.vector_store %arg10[%15, %c0_10], %12 {strides = array<i32>} : memref<8x1xf32, #tpu.memory_space<vmem>>, vector<8x1xf32>,
    %c0_i32_11 = arith.constant 0 : i32
    %17 = arith.cmpi eq, %arg1, %c0_i32_11 : i32
    %18 = arith.extui %17 : i1 to i32
    %c0_i32_12 = arith.constant 0 : i32
    %19 = arith.cmpi ne, %18, %c0_i32_12 : i32
    scf.if %19 {
      %c0_13 = arith.constant 0 : index
      %c0_14 = arith.constant 0 : index
      %20 = vector.load %arg10[%c0_13, %c0_14] : memref<8x1xf32, #tpu.memory_space<vmem>>, vector<8x1xf32>
      %cst_15 = arith.constant dense<0xFF800000> : vector<1xf32>
      %21 = vector.multi_reduction <maximumf>, %20, %cst_15 [0] : vector<8x1xf32> to vector<1xf32>
      %22 = vector.shape_cast %21 : vector<1xf32> to vector<1x1xf32>
      %23 = vector.broadcast %22 : vector<1x1xf32> to vector<8x1xf32>
      %24 = arith.subf %20, %23 : vector<8x1xf32>
      %25 = math.exp %24 : vector<8x1xf32>
      %cst_16 = arith.constant dense<0.000000e+00> : vector<1xf32>
      %26 = vector.multi_reduction <add>, %25, %cst_16 [0] : vector<8x1xf32> to vector<1xf32>
      %27 = vector.shape_cast %26 : vector<1xf32> to vector<1x1xf32>
      %28 = tpu.reciprocal %27 {approx = true} : vector<1x1xf32> -> vector<1x1xf32>
      %29 = vector.broadcast %28 : vector<1x1xf32> to vector<8x1xf32>
      %30 = arith.mulf %25, %29 : vector<8x1xf32>
      %c0_17 = arith.constant 0 : index
      %c0_18 = arith.constant 0 : index
      %c0_19 = arith.constant 0 : index
      %31 = vector.load %arg8[%c0_17, %c0_18, %c0_19] : memref<1x8x1xf32, #tpu.memory_space<vmem>>, vector<1x8x1xf32>
      %32 = vector.shape_cast %31 : vector<1x8x1xf32> to vector<8x1xf32>
      %33 = vector.shape_cast %30 : vector<8x1xf32> to vector<1x8x1xf32>
      tpu.vector_store %arg8[%c0_17, %c0_18, %c0_19], %33 {strides = array<i32>} : memref<1x8x1xf32, #tpu.memory_space<vmem>>, vector<1x8x1xf32>,
    } else {
    }
    return
  }
  func.func @transform_0(%arg0: i32, %arg1: i32) -> (i32, i32, i32) {
    %c0_i32 = arith.constant 0 : i32
    %c0_i32_0 = arith.constant 0 : i32
    %c0_i32_1 = arith.constant 0 : i32
    return %arg0, %c0_i32, %c0_i32_0 : i32, i32, i32
  }
  func.func @transform_1(%arg0: i32, %arg1: i32) -> (i32, i32, i32) {
    %c0_i32 = arith.constant 0 : i32
    %c0_i32_0 = arith.constant 0 : i32
    return %arg0, %arg1, %c0_i32 : i32, i32, i32
  }
  func.func @transform_2(%arg0: i32, %arg1: i32) -> (i32, i32) {
    %c0_i32 = arith.constant 0 : i32
    %c0_i32_0 = arith.constant 0 : i32
    %c0_i32_1 = arith.constant 0 : i32
    return %c0_i32, %c0_i32_0 : i32, i32
  }
  func.func @transform_3(%arg0: i32, %arg1: i32) -> (i32, i32) {
    %c0_i32 = arith.constant 0 : i32
    %c0_i32_0 = arith.constant 0 : i32
    %c0_i32_1 = arith.constant 0 : i32
    return %c0_i32, %c0_i32_0 : i32, i32
  }
  func.func @transform_4(%arg0: i32, %arg1: i32) -> (i32, i32) {
    %c0_i32 = arith.constant 0 : i32
    %c0_i32_0 = arith.constant 0 : i32
    %c0_i32_1 = arith.constant 0 : i32
    return %c0_i32, %c0_i32_0 : i32, i32
  }
  func.func @transform_5(%arg0: i32, %arg1: i32) -> (i32, i32) {
    %c0_i32 = arith.constant 0 : i32
    %c0_i32_0 = arith.constant 0 : i32
    %c0_i32_1 = arith.constant 0 : i32
    return %c0_i32, %c0_i32_0 : i32, i32
  }
  func.func @transform_6(%arg0: i32, %arg1: i32) -> (i32, i32, i32) {
    %c0_i32 = arith.constant 0 : i32
    %c0_i32_0 = arith.constant 0 : i32
    %c0_i32_1 = arith.constant 0 : i32
    return %arg0, %c0_i32, %c0_i32_0 : i32, i32, i32
  }
}

</mosaic_0001>

<bundles_post_ra>
// kernel: tpu_custom_call.1
= control target key start
LH: loop header
LB: loop body
LE: loop exit
PB: predicated region body
PF: predicated region fallthrough
CT: control target
= control target key end

     0   :  { %11 = vsyncpa [#allocation5], 0  ;;  %s1204_s0 = inlined_call_operand.vmem [shape: f32[2,1,32], index: 0, kind: input, shape index: {}]   ;;  %s1205_s1 = inlined_call_operand.hbm [shape: f32[2,8,32], index: 1, kind: input, shape index: {}]   ;;  %s1206_s2 = inlined_call_operand.vmem [shape: f32[32,32], index: 2, kind: input, shape index: {}]   ;;  %s1207_s3 = inlined_call_operand.hbm [shape: f32[32,32], index: 3, kind: input, shape index: {}]   ;;  %s1208_s4 = inlined_call_operand.vmem [shape: f32[1,32], index: 4, kind: input, shape index: {}]   ;;  %s1209_s5 = inlined_call_operand.vmem [shape: f32[32,1], index: 5, kind: input, shape index: {}]   ;;  %s1210_s6 = inlined_call_operand.vmem [shape: f32[2,8,1], index: 6, kind: output, shape index: {}]  }
   0x1   :  { %13 = vsyncpa [#allocation5 + $0x1], 0 }
   0x2   :  { %14 = vsyncpa [#allocation7], 0  ;;  %s1000_s21 = smov 0   ;;  %s1002_s22 = smov 0  }
   0x3   :  { %s1004_s23 = smov 0   ;;  %s1006_s24 = smov 0  }
   0x4   :  { %s1008_s25 = smov 0   ;;  %s1010_s26 = smov 0  }
   0x5 LB: > { %s684_s27 = sadd.s32 4294967295, %s956_s26   ;;  %p80_p0 = scmp.ne.s32.totalorder %s940_s22, %s936_s21  ;;  %s956_s26 = sphi %s1010_s26, %s20_s26   ;;  %s952_s25 = sphi %s1008_s25, %s1227_s25   ;;  %s948_s24 = sphi %s1006_s24, %s1226_s24   ;;  %s944_s23 = sphi %s1004_s23, %s1225_s23   ;;  %s940_s22 = sphi %s1002_s22, %s1224_s22   ;;  %s936_s21 = sphi %s1000_s21, %s1223_s21  }
   0x6   : > { %p1030_p1 = scmp.eq.s32.totalorder %s684_s27, 0  ;;  %p686_p2 = scmp.ge.s32.totalorder %s956_s26, 1 }
   0x7   : > { %p201_p3 = scmp.lt.s32.totalorder %s956_s26, 3  ;;  %s958_s7 = smov [#allocation6]  }
   0x8   : > { %s1215_s28 = scalar_select %p1030_p1, 1, 0 }
   0x9   : > { %p1038_p4 = por %p1030_p1, %p80_p0  ;;  %p1042_p5 = pnand %p686_p2, %p201_p3 }
   0xa   : > { %s216_s8 = sshll.u32 %s958_s7, 4  ;;  %s32_s10 = sadd.s32 1, %s952_s25  ;;  %s217_s8 = int_to_ptr.vmem [resolvable:$true] %s216_s8 }
   0xb   : > { %s1216_s29 = scalar_select %p1038_p4, 1, 0 }
   0xc   : > { %s1217_s30 = scalar_select %p1042_p5, 1, 0 }
   0xd   : > { %p773_p6 = pneg %p1042_p5  ;;  %s844_s13 = scalar_lea.hbm %s1207_s3, 512 }
   0xe   : > { %p845_p8 = scmp.ne.s32.totalorder %s1207_s3, %s844_s13  ;;  %p851_p12 = scmp.lt.u32.totalorder %s844_s13, %s1207_s3 }
   0xf   : > { %p1050_p7 = pnand %p773_p6, %p1030_p1 }
  0x11   : > { %p846_p9 = pneg %p1050_p7 }
  0x13   : > { %p847_p10 = pnand %p846_p9, %p845_p8 }
  0x15   : > { %p848_p11 = pneg %p847_p10 }
  0x17   : > { %p853_p13 = pnand %p851_p12, %p848_p11 }
  0x19   : > { %856 = shalt.err (!%p853_p13)
}
  0x1a   : > { %s857_s18 = scalar_lea.vmem %s217_s8, 512  ;;  %p865_p6 = scmp.lt.s32.totalorder %s217_s8, %s217_s8 }
  0x1b   : > { %p858_p0 = scmp.ne.s32.totalorder %s217_s8, %s857_s18  ;;  %p866_p1 = scmp.lt.s32.totalorder %s857_s18, %s857_s18 }
  0x1d   : > { %p860_p2 = pnand %p858_p0, %p846_p9  ;;  %p867_p4 = por %p866_p1, %p865_p6 }
  0x1f   : > { %p861_p3 = pneg %p860_p2 }
  0x21   : > { %p868_p5 = pnand %p867_p4, %p861_p3 }
  0x23   : > { %871 = shalt.err (!%p868_p5)
}
  0x24   : > { %s959_s19 = smov 128   ;;  %s960_s20 = smov 8  }
  0x25   : > { %776 = dma.hbm_to_vmem [thread:$0]  (!%p1050_p7), %s1207_s3, 512, %s217_s8, [#allocation7], %s959_s19, %s959_s19, %s960_s20  }
  0x26   : > { %p34_p1 = scmp.ge.s32.totalorder %s32_s10, 2  ;;  %s67_s7 = sadd.s32 1, %s944_s23 }
  0x27   : > { %p74_p4 = scmp.ne.s32.totalorder %s944_s23, %s940_s22  ;;  %p75_p5 = scmp.eq.s32.totalorder %s956_s26, 0 }
  0x28   : > { %s1229_s10 = smov (%p34_p1, %s32_s10), 0  ;;  %p782_p9 = scmp.lt.s32.totalorder %s956_s26, 2 }
  0x29   : > { %p76_p8 = por %p75_p5, %p74_p4  ;;  %s62_s11 = ssub.s32 %s952_s25, %s1229_s10 }
  0x2a   : > { %s242_s12 = sand.u32 1, %s944_s23   ;;  %p65_p10 = scmp.eq.s32.totalorder %s62_s11, 0 }
  0x2b   : > { %s689_s13 = sshll.u32 %s242_s12, 3  ;;  %s690_s14 = sshll.u32 %s952_s25, 7 }
  0x2c   : > { %s1083_s15 = scalar_select %p65_p10, %s944_s23, %s67_s7  }
  0x2d   : > { %s1088_s8 = scalar_lea.hbm %s1205_s1, %s690_s14  ;;  %s246_s17 = scalar_lea.vmem [#allocation4], %s689_s13 }
  0x2e   : > { %s254_s18 = sshll.u32 %s246_s17, 4  ;;  %p1090_p7 = pnand %p782_p9, %p76_p8  ;;  %s1094_s18 = int_to_ptr.vmem [resolvable:$true] %s254_s18 }
  0x2f   : > { %s243_s20 = scalar_lea.sflag [#allocation5], %s242_s12  ;;  %s872_s21 = scalar_lea.hbm %s1088_s8, 128 }
  0x30   : > { %p873_p11 = scmp.ne.s32.totalorder %s1088_s8, %s872_s21  ;;  %p874_p12 = pneg %p1090_p7 }
  0x31   : > { %s877_s11 = scalar_lea.hbm %s1205_s1, 256  ;;  %p878_p2 = scmp.lt.u32.totalorder %s1088_s8, %s1205_s1 }
  0x32   : > { %p875_p13 = pnand %p874_p12, %p873_p11  ;;  %p879_p3 = scmp.lt.u32.totalorder %s877_s11, %s872_s21 }
  0x33   : > { %p881_p1 = scmp.lt.u32.totalorder %s872_s21, %s1088_s8 }
  0x34   : > { %p876_p0 = pneg %p875_p13  ;;  %p880_p6 = por %p879_p3, %p878_p2 }
  0x36   : > { %p882_p4 = por %p881_p1, %p880_p6 }
  0x38   : > { %p883_p5 = pnand %p882_p4, %p876_p0 }
  0x3a   : > { %886 = shalt.err (!%p883_p5)
}
  0x3b   : > { %s887_s12 = scalar_lea.vmem %s1094_s18, 128  ;;  %s961_s9 = smov [#allocation4]  }
  0x3c   : > { %p888_p8 = scmp.ne.s32.totalorder %s1094_s18, %s887_s12  ;;  %s892_s16 = sshll.u32 %s961_s9, 4  ;;  %s893_s16 = int_to_ptr.vmem [resolvable:$false] %s892_s16 }
  0x3d   : > { %s894_s17 = scalar_lea.vmem %s893_s16, 256  ;;  %p895_p11 = scmp.lt.s32.totalorder %s1094_s18, %s893_s16 }
  0x3e   : > { %p890_p9 = pnand %p888_p8, %p874_p12  ;;  %p896_p13 = scmp.lt.s32.totalorder %s894_s17, %s887_s12 }
  0x40   : > { %p891_p10 = pneg %p890_p9  ;;  %p897_p2 = por %p896_p13, %p895_p11 }
  0x42   : > { %p898_p3 = pnand %p897_p2, %p891_p10 }
  0x44   : > { %901 = shalt.err (!%p898_p3)
}
  0x45   : > { %780 = dma.hbm_to_vmem [thread:$0]  (!%p1090_p7), %s1088_s8, 128, %s1094_s18, %s243_s20  }
  0x46   : > { %p1220_p0 = scmp.ne.s32.totalorder %s1217_s30, 0 }
  0x47   : > { %s265_s21 = sand.u32 (!%p1220_p0), 1, %s940_s22   ;;  %p1221_p12 = scmp.ne.s32.totalorder (!%p1220_p0), %s1216_s29, 0 }
  0x48   : > { %263 = sbr.rel (%p1220_p0) target bundleno = 604 (0x25c), region = 44  ;;  %s1124_s27 = sshll.u32 (!%p1220_p0), %s265_s21, 3 }
  0x49   : > { %s266_s7 = scalar_lea.sflag (!%p1220_p0), [#allocation5], %s265_s21  ;;  %s269_s11 = scalar_lea.vmem (!%p1220_p0), [#allocation4], %s1124_s27 }
  0x4f   : > { %927 = dma.done.wait (%p1221_p12), %s266_s7, 128  }
  0x50   : > { %929 = vsyncadd (%p1221_p12), %s266_s7, 4294967168  ;;  %p1222_p6 = scmp.ne.s32.totalorder %s1215_s28, 0 }
  0x52   : > { %931 = dma.done.wait (%p1222_p6), [#allocation7], 512  }
  0x53   : > { %933 = vsyncadd (%p1222_p6), [#allocation7], 4294966784  ;;  %v962_v0 = vmov 0.0|0.0   ;;  %vm963_vm0 = vmmov 0   ;;  %v964_v1 = vmov 0.0   ;;  %p304_p7 = scmp.lt.s32.totalorder %s948_s24, 1 }
  0x54   : > { %749 = vmatprep.subr.bf16.mxu0 %v962_v0  ;;  %724 = vmatprep.mubr.msk.f32.mxu0 %vm963_vm0, %v964_v1  ;;  %v316_v2 = vld [vmem:[%s1206_s2] sm:$0xff]  ;;  %v317_v3 = vld [vmem:[%s1206_s2 + $0x8] sm:$0xff]  ;;  %v318_v4 = vld [vmem:[%s1206_s2 + $0x10] sm:$0xff]  ;;  %vm321_vm1 = vcmask 261120   ;;  %vm395_vm2 = vcmask 253952   ;;  %vm563_vm3 = vcmask 7168  }
  0x55   : > { %755 = vmatprep.subr.bf16.mxu1 %v962_v0  ;;  %735 = vmatprep.mubr.msk.f32.mxu1 %vm963_vm0, %v964_v1  ;;  %s1231_s24 = smov (!%p304_p7, %s948_s24), 1  ;;  %v750_v5 = vpack.c.bf16 %v317_v3, %v316_v2  ;;  %v319_v6 = vld [vmem:[%s1206_s2 + $0x18] sm:$0xff]  ;;  %v399_v8 = vld [vmem:[#allocation6 + $0x8] sm:$0xff]  ;;  %v400_v9 = vld [vmem:[#allocation6 + $0x10] sm:$0xff] }
  0x56   : > { %v398_v7 = vld [vmem:[#allocation6] sm:$0xff]  ;;  %v401_v10 = vld [vmem:[#allocation6 + $0x18] sm:$0xff]  ;;  %v753_v11 = vpack.c.bf16 %v319_v6, %v318_v4  ;;  %s306_s9 = scalar_lea.vmem %s1204_s0, %s1231_s24  ;;  %v485_v17 = vld [vmem:[%s1209_s5 + $0x8] sm:$0xff]  ;;  %s694_s28 = sshll.u32 %s1231_s24, 3 }
  0x57   : > { %751 = vmatpush3.bf16.msra.mxu0 %v750_v5  ;;  %v756_v12 = vpack.c.bf16 %v399_v8, %v398_v7  ;;  %v759_v13 = vpack.c.bf16 %v401_v10, %v400_v9  ;;  %v315_v14 = vld [vmem:[%s306_s9] sm:$0x1]  ;;  %v397_v15 = vld [vmem:[%s269_s11] sm:$0xff]  ;;  %s310_s13 = scalar_lea.vmem %s1210_s6, %s694_s28 }
  0x58   : > { %752 = vmatprep.subr.bf16.mxu0 %v962_v0  ;;  %v484_v16 = vld [vmem:[%s1209_s5] sm:$0xff]  ;;  %v486_v18 = vld [vmem:[%s1209_s5 + $0x10] sm:$0xff]  ;;  %v487_v20 = vld [vmem:[%s1209_s5 + $0x18] sm:$0xff] }
  0x59   : > { %757 = vmatpush3.bf16.msra.mxu1 %v756_v12  ;;  %v762_v19 = vpack.c.bf16 %v485_v17, %v484_v16  ;;  %v765_v21 = vpack.c.bf16 %v487_v20, %v486_v18  ;;  %v320_v22 = vld [vmem:[%s1208_s4] sm:$0x1] }
  0x5a   : > { %758 = vmatprep.subr.bf16.mxu1 %v962_v0 }
  0x5b   : > { %754 = vmatpush3.bf16.msra.mxu0 %v753_v11 }
  0x5c   : > { %761 = vmatprep.subr.bf16.mxu0 %v962_v0 }
  0x5d   : > { %760 = vmatpush3.bf16.msra.mxu1 %v759_v13 }
  0x5e   : > { %725 = vmatmul.mubr.msk.f32.vlgmr.msra.gmra.mrb[0].mxu0 %vm321_vm1, %v315_v14 }
  0x5f   : > { %746 = vmatprep.mubr.msk.f32.mxu0 %vm963_vm0, %v964_v1  ;;  %763 = vmatpush3.bf16.msra.mxu0 %v762_v19 }
  0x60   : > { %736 = vmatmul.mubr.msk.f32.vlgmr.msra.gmra.mrb[0].mxu1 %vm321_vm1, %v397_v15  ;;  %764 = vmatprep.subr.bf16.mxu0 %v962_v0 }
  0x63   : > { %766 = vmatpush3.bf16.msra.mxu0 %v765_v21 }
 0x131   : > { %v391_v23 = vpop.f32.mrb[0].mxu0 }
 0x132   : > { %v392_v24 = vadd.f32 %v391_v23, %v320_v22  ;;  %v726_v25 = vpop.f32.mrb[1].mxu0 }
 0x133   : > { %v479_v26 = vpop.f32.mrb[0].mxu1 }
 0x134   : > { %396 = vst.msk [vmem:[#allocation2] sm:$0x1] %vm395_vm2, %v392_v24  ;;  %v737_v27 = vpop.f32.mrb[1].mxu1 }
 0x13b   : > { %v696_v28 = vld [vmem:[#allocation2] ss:$0 sm:$0xff] }
 0x13c   : > { %v480_v29 = vadd.f32 %v696_v28, %v479_v26 }
 0x13e   : > { %838 = vtanh.f32 %v480_v29 }
 0x148   : > { %v839_v30 = vpop.eup %838 }
 0x149   : > { %747 = vmatmul.mubr.msk.f32.vlgmr.msra.gmra.mrb[2].mxu0 %vm321_vm1, %v839_v30 }
 0x21c   : > { %v557_v31 = vpop.f32.mrb[2].mxu0 }
 0x21d   : > { %564 = vst.msk [vmem:[#allocation3] sm:$0xff] %vm563_vm3, %v557_v31  ;;  %v748_v32 = vpop.f32.mrb[3].mxu0 }
 0x224   : > { %v568_v33 = vld [vmem:[#allocation3] sm:$0xff] }
 0x225   : > { %v569_v34 = vsel %vm563_vm3, %v568_v33, -inf }
 0x226   : > { %v570_v35 = vrot.slane %v569_v34, 4 }
 0x228   : > { %v571_v36 = vmax.f32 %v569_v34, %v570_v35 }
 0x22a   : > { %v572_v37 = vrot.slane %v571_v36, 2 }
 0x22c   : > { %v573_v38 = vmax.f32 %v571_v36, %v572_v37 }
 0x22e   : > { %v574_v39 = vrot.slane %v573_v38, 1 }
 0x230   : > { %v575_v40 = vmax.f32 %v573_v38, %v574_v39 }
 0x232   : > { %v576_v41 = vsub.f32 %v568_v33, %v575_v40 }
 0x234   : > { %v577_v42 = vmul.f32 1.442695, %v576_v41 }
 0x236   : > { %840 = vpow2.f32 %v577_v42 }
 0x240   : > { %v841_v43 = vpop.eup %840 }
 0x241   : > { %v579_v44 = vsel %vm563_vm3, %v841_v43, 0.0 }
 0x242   : > { %v580_v45 = vrot.slane %v579_v44, 4 }
 0x244   : > { %v581_v46 = vadd.f32 %v580_v45, %v579_v44 }
 0x246   : > { %v582_v47 = vrot.slane %v581_v46, 2 }
 0x248   : > { %v583_v48 = vadd.f32 %v582_v47, %v581_v46 }
 0x24a   : > { %v584_v49 = vrot.slane %v583_v48, 1 }
 0x24c   : > { %v585_v50 = vadd.f32 %v584_v49, %v583_v48 }
 0x24e   : > { %842 = vrcp.f32 %v585_v50 }
 0x258   : > { %v843_v51 = vpop.eup %842 }
 0x259   : > { %v587_v52 = vmul.f32 %v843_v51, %v841_v43 }
 0x25b   : > { %588 = vst.msk [vmem:[%s310_s13] sm:$0xff] %vm563_vm3, %v587_v52 }
 0x25c PF: > { %s20_s26 = sadd.s32 1, %s956_s26   ;;  %s1223_s21 = smov %s940_s22 }
 0x25d   : > { %p17_p1 = scmp.ge.s32.totalorder %s20_s26, 4   ;;  %s1224_s22 = smov %s944_s23 }
 0x25e   : > { %s1225_s23 = smov %s1083_s15  ;;  %s1226_s24 = smov %s952_s25 }
 0x25f   : > { %s1227_s25 = smov %s1229_s10  ;;  %19 = sbr.rel (!%p17_p1) target bundleno = 5 (0x5), region = 100 }
 0x266   :  { %608 = vsyncpa [#allocation5], 1 }
 0x267   :  { %610 = vsyncpa [#allocation5 + $0x1], 1 }
 0x268   :  { %611 = vsyncpa [#allocation7], 1 }

</bundles_post_ra>
